<compile_context>
chip_gen: v6e
topology: v6e:2x2x1
jax: 0.10.0
libtpu: 0.0.40
codegen_flags: <defaults>
</compile_context>

<pallas_src>
import functools

import jax
import jax.numpy as jnp
from jax.experimental import pallas as pl
from jax.experimental.pallas import tpu as pltpu


def _round_up(x, m):
    return ((x + m - 1) // m) * m


def _fused_mlp_kernel(*refs, num_layers):
    # refs = (x_ref, w0, b0, w1, b1, ..., w_{L-1}, b_{L-1}, o_ref)
    x_ref = refs[0]
    o_ref = refs[-1]

    h = x_ref[...]  # (tm, K0p) f32
    for l in range(num_layers):           # static Python loop (layer count static)
        w = refs[1 + 2 * l][...]           # (Kp_l, Np_l) bf16
        b = refs[2 + 2 * l][...]           # (1, Np_l)   f32
        acc = jnp.dot(h.astype(jnp.bfloat16), w,
                      preferred_element_type=jnp.float32)   # MXU, f32 accum
        acc = acc + b                      # f32 epilogue (broadcast over rows)
        if l < num_layers - 1:
            acc = jax.nn.sigmoid(acc)      # f32 EUP
        h = acc
    o_ref[...] = h.astype(o_ref.dtype)


def fused_mlp_forward(x, params):
    """Run the whole MLP in one Pallas kernel.

    x: (M, K0) f32.  params: list of (w, b), w (in_dim, out_dim) f32,
    b (out_dim,) f32.  Returns (M, out_dim_last) f32.
    """
    M, K0 = x.shape
    num_layers = len(params)
    assert num_layers >= 1 and params[0][0].shape[0] == K0

    # ---- pad every feature dim to the 128-lane width -----------------------
    dims = [K0] + [w.shape[1] for (w, _) in params]
    pdims = [_round_up(d, 128) for d in dims]

    # ---- batch tiling: multiple of 8, cdiv grid, zero-padded tail ----------
    if M <= 128:
        tm = _round_up(M, 8)
    elif M < 512:
        tm = 128
    else:
        tm = 256
    Mp = _round_up(M, tm)
    grid = (Mp // tm,)

    xp = jnp.zeros((Mp, pdims[0]), jnp.float32).at[:M, :K0].set(x)

    flat_inputs = [xp]
    in_specs = [pl.BlockSpec((tm, pdims[0]), lambda i: (i, 0))]
    weight_bytes = 0
    for l, (w, b) in enumerate(params):
        kin, kout = w.shape
        wp = jnp.zeros((pdims[l], pdims[l + 1]), jnp.bfloat16)
        wp = wp.at[:kin, :kout].set(w.astype(jnp.bfloat16))
        bp = jnp.zeros((1, pdims[l + 1]), jnp.float32).at[0, :kout].set(b)
        flat_inputs += [wp, bp]
        # grid-invariant blocks: constant index_map -> fetched once
        in_specs += [
            pl.BlockSpec((pdims[l], pdims[l + 1]), lambda i: (0, 0)),
            pl.BlockSpec((1, pdims[l + 1]), lambda i: (0, 0)),
        ]
        weight_bytes += wp.size * 2 + bp.size * 4

    out_specs = pl.BlockSpec((tm, pdims[-1]), lambda i: (i, 0))

    # ---- scheduler hints / VMEM budget -------------------------------------
    flops = sum(2 * Mp * pdims[l] * pdims[l + 1] for l in range(num_layers))
    transcendentals = sum(Mp * pdims[l + 1] for l in range(num_layers - 1))
    bytes_accessed = (xp.size * 4 + weight_bytes + Mp * pdims[-1] * 4)
    cost = pl.CostEstimate(flops=flops, transcendentals=transcendentals,
                           bytes_accessed=bytes_accessed)

    act_bytes = (tm * pdims[0] + tm * pdims[-1] + tm * max(pdims)) * 4
    vmem_needed = 2 * (weight_bytes + act_bytes) + (1 << 20)  # dbl-buffer + headroom
    vmem_limit = None
    if vmem_needed > (32 << 20):
        # Stay under v7x's 64 MiB/TC physical VMEM; beyond that a K/N-tiled
        # per-layer accumulator path would be required for very large layers.
        vmem_limit = min(vmem_needed, 56 << 20)

    out = pl.pallas_call(
        functools.partial(_fused_mlp_kernel, num_layers=num_layers),
        out_shape=jax.ShapeDtypeStruct((Mp, pdims[-1]), jnp.float32),
        grid_spec=pltpu.PrefetchScalarGridSpec(
            num_scalar_prefetch=0,
            grid=grid,
            in_specs=in_specs,
            out_specs=out_specs,
        ),
        compiler_params=pltpu.CompilerParams(
            dimension_semantics=("parallel",),
            vmem_limit_bytes=vmem_limit,
        ),
        cost_estimate=cost,
    )(*flat_inputs)

    return out[:M, :dims[-1]]


class MLP:
    """JAX/Pallas port of the PyTorch MLP module (fused forward pass)."""

    def __init__(self, layers_lst, key):
        self.params = []
        for in_dim, out_dim in layers_lst:
            key, kw, kb = jax.random.split(key, 3)
            bound = 1.0 / jnp.sqrt(jnp.float32(in_dim))
            # Stored as (in_dim, out_dim) == PyTorch weight.T
            w = jax.random.uniform(kw, (in_dim, out_dim), jnp.float32,
                                   minval=-bound, maxval=bound)
            b = jax.random.uniform(kb, (out_dim,), jnp.float32,
                                   minval=-bound, maxval=bound)
            self.params.append((w, b))

    def __call__(self, x):
        return fused_mlp_forward(x, self.params)


def _reference_forward(params, x):
    n = len(params)
    for idx, (w, b) in enumerate(params):
        x = x @ w + b
        if idx != n - 1:
            x = jax.nn.sigmoid(x)
    return x


if __name__ == "__main__":
    key = jax.random.PRNGKey(0)
    key, k_in, k_params = jax.random.split(key, 3)

    # Small MLP: 32 -> 64 -> 64 -> 16
    layers_lst = [(32, 64), (64, 64), (64, 16)]
    batch = 8

    model = MLP(layers_lst, k_params)
    x = jax.random.normal(k_in, (batch, layers_lst[0][0]), jnp.float32)

    y = model(x)
    y = jax.block_until_ready(y)

    y_ref = _reference_forward(model.params, x)
    assert y.shape == (batch, layers_lst[-1][1])
    # bf16 MXU inputs with f32 accumulation: compare against the f32 reference
    # with a correspondingly loosened tolerance.
    assert jnp.allclose(y, y_ref, atol=2e-2, rtol=2e-2), float(
        jnp.max(jnp.abs(y - y_ref)))

    print("KERNEL_OK")
</pallas_src>

<mosaic_0001>
module attributes {stable_mosaic.version = 11 : i64} {
  func.func @_fused_mlp_kernel(%arg0: i32, %arg1: memref<8x128xf32, #tpu.memory_space<vmem>>, %arg2: memref<128x128xbf16, #tpu.memory_space<vmem>>, %arg3: memref<1x128xf32, #tpu.memory_space<vmem>>, %arg4: memref<128x128xbf16, #tpu.memory_space<vmem>>, %arg5: memref<1x128xf32, #tpu.memory_space<vmem>>, %arg6: memref<128x128xbf16, #tpu.memory_space<vmem>>, %arg7: memref<1x128xf32, #tpu.memory_space<vmem>>, %arg8: memref<8x128xf32, #tpu.memory_space<vmem>>) attributes {dimension_semantics = [#tpu.dimension_semantics<parallel>], iteration_bounds = array<i64: 1>, scalar_prefetch = 0 : i64, scratch_operands = 0 : i64, tpu.core_type = #tpu.core_type<tc>, window_params = [{transform_indices = @transform_0, window_bounds = array<i64: 8, 128>}, {pipeline_mode = #tpu.pipeline_mode<synchronous>, transform_indices = @transform_1, window_bounds = array<i64: 128, 128>}, {pipeline_mode = #tpu.pipeline_mode<synchronous>, transform_indices = @transform_2, window_bounds = array<i64: 1, 128>}, {pipeline_mode = #tpu.pipeline_mode<synchronous>, transform_indices = @transform_3, window_bounds = array<i64: 128, 128>}, {pipeline_mode = #tpu.pipeline_mode<synchronous>, transform_indices = @transform_4, window_bounds = array<i64: 1, 128>}, {pipeline_mode = #tpu.pipeline_mode<synchronous>, transform_indices = @transform_5, window_bounds = array<i64: 128, 128>}, {pipeline_mode = #tpu.pipeline_mode<synchronous>, transform_indices = @transform_6, window_bounds = array<i64: 1, 128>}, {transform_indices = @transform_7, window_bounds = array<i64: 8, 128>}]} {
    %c0 = arith.constant 0 : index
    %c0_0 = arith.constant 0 : index
    %0 = vector.load %arg1[%c0, %c0_0] : memref<8x128xf32, #tpu.memory_space<vmem>>, vector<8x128xf32>
    %c0_1 = arith.constant 0 : index
    %c0_2 = arith.constant 0 : index
    %1 = vector.load %arg2[%c0_1, %c0_2] : memref<128x128xbf16, #tpu.memory_space<vmem>>, vector<128x128xbf16>
    %c0_3 = arith.constant 0 : index
    %c0_4 = arith.constant 0 : index
    %2 = vector.load %arg3[%c0_3, %c0_4] : memref<1x128xf32, #tpu.memory_space<vmem>>, vector<1x128xf32>
    %3 = arith.truncf %0 : vector<8x128xf32> to vector<8x128xbf16>
    %cst = arith.constant dense<0.000000e+00> : vector<8x128xf32>
    %4 = tpu.matmul %3, %1, %cst {dimension_numbers = #tpu.dot_dimension_numbers<[1], [0], [0], [1], [0, 0, 1, 1], [], []>} : vector<8x128xbf16>, vector<128x128xbf16>, vector<8x128xf32> -> vector<8x128xf32>
    %5 = vector.broadcast %2 : vector<1x128xf32> to vector<8x128xf32>
    %6 = arith.addf %4, %5 : vector<8x128xf32>
    %7 = arith.negf %6 : vector<8x128xf32>
    %8 = math.exp %7 : vector<8x128xf32>
    %cst_5 = arith.constant 1.000000e+00 : f32
    %9 = vector.broadcast %cst_5 : f32 to vector<8x128xf32>
    %10 = arith.addf %9, %8 : vector<8x128xf32>
    %11 = arith.divf %9, %10 : vector<8x128xf32>
    %c0_6 = arith.constant 0 : index
    %c0_7 = arith.constant 0 : index
    %12 = vector.load %arg4[%c0_6, %c0_7] : memref<128x128xbf16, #tpu.memory_space<vmem>>, vector<128x128xbf16>
    %c0_8 = arith.constant 0 : index
    %c0_9 = arith.constant 0 : index
    %13 = vector.load %arg5[%c0_8, %c0_9] : memref<1x128xf32, #tpu.memory_space<vmem>>, vector<1x128xf32>
    %14 = arith.truncf %11 : vector<8x128xf32> to vector<8x128xbf16>
    %cst_10 = arith.constant dense<0.000000e+00> : vector<8x128xf32>
    %15 = tpu.matmul %14, %12, %cst_10 {dimension_numbers = #tpu.dot_dimension_numbers<[1], [0], [0], [1], [0, 0, 1, 1], [], []>} : vector<8x128xbf16>, vector<128x128xbf16>, vector<8x128xf32> -> vector<8x128xf32>
    %16 = vector.broadcast %13 : vector<1x128xf32> to vector<8x128xf32>
    %17 = arith.addf %15, %16 : vector<8x128xf32>
    %18 = arith.negf %17 : vector<8x128xf32>
    %19 = math.exp %18 : vector<8x128xf32>
    %cst_11 = arith.constant 1.000000e+00 : f32
    %20 = vector.broadcast %cst_11 : f32 to vector<8x128xf32>
    %21 = arith.addf %20, %19 : vector<8x128xf32>
    %22 = arith.divf %20, %21 : vector<8x128xf32>
    %c0_12 = arith.constant 0 : index
    %c0_13 = arith.constant 0 : index
    %23 = vector.load %arg6[%c0_12, %c0_13] : memref<128x128xbf16, #tpu.memory_space<vmem>>, vector<128x128xbf16>
    %c0_14 = arith.constant 0 : index
    %c0_15 = arith.constant 0 : index
    %24 = vector.load %arg7[%c0_14, %c0_15] : memref<1x128xf32, #tpu.memory_space<vmem>>, vector<1x128xf32>
    %25 = arith.truncf %22 : vector<8x128xf32> to vector<8x128xbf16>
    %cst_16 = arith.constant dense<0.000000e+00> : vector<8x128xf32>
    %26 = tpu.matmul %25, %23, %cst_16 {dimension_numbers = #tpu.dot_dimension_numbers<[1], [0], [0], [1], [0, 0, 1, 1], [], []>} : vector<8x128xbf16>, vector<128x128xbf16>, vector<8x128xf32> -> vector<8x128xf32>
    %27 = vector.broadcast %24 : vector<1x128xf32> to vector<8x128xf32>
    %28 = arith.addf %26, %27 : vector<8x128xf32>
    %c0_17 = arith.constant 0 : index
    %c0_18 = arith.constant 0 : index
    %29 = vector.load %arg8[%c0_17, %c0_18] : memref<8x128xf32, #tpu.memory_space<vmem>>, vector<8x128xf32>
    tpu.vector_store %arg8[%c0_17, %c0_18], %28 {strides = array<i32>} : memref<8x128xf32, #tpu.memory_space<vmem>>, vector<8x128xf32>,
    return
  }
  func.func @transform_0(%arg0: i32) -> (i32, i32) {
    %c0_i32 = arith.constant 0 : i32
    %c0_i32_0 = arith.constant 0 : i32
    return %arg0, %c0_i32 : i32, i32
  }
  func.func @transform_1(%arg0: i32) -> (i32, i32) {
    %c0_i32 = arith.constant 0 : i32
    %c0_i32_0 = arith.constant 0 : i32
    %c0_i32_1 = arith.constant 0 : i32
    return %c0_i32, %c0_i32_0 : i32, i32
  }
  func.func @transform_2(%arg0: i32) -> (i32, i32) {
    %c0_i32 = arith.constant 0 : i32
    %c0_i32_0 = arith.constant 0 : i32
    %c0_i32_1 = arith.constant 0 : i32
    return %c0_i32, %c0_i32_0 : i32, i32
  }
  func.func @transform_3(%arg0: i32) -> (i32, i32) {
    %c0_i32 = arith.constant 0 : i32
    %c0_i32_0 = arith.constant 0 : i32
    %c0_i32_1 = arith.constant 0 : i32
    return %c0_i32, %c0_i32_0 : i32, i32
  }
  func.func @transform_4(%arg0: i32) -> (i32, i32) {
    %c0_i32 = arith.constant 0 : i32
    %c0_i32_0 = arith.constant 0 : i32
    %c0_i32_1 = arith.constant 0 : i32
    return %c0_i32, %c0_i32_0 : i32, i32
  }
  func.func @transform_5(%arg0: i32) -> (i32, i32) {
    %c0_i32 = arith.constant 0 : i32
    %c0_i32_0 = arith.constant 0 : i32
    %c0_i32_1 = arith.constant 0 : i32
    return %c0_i32, %c0_i32_0 : i32, i32
  }
  func.func @transform_6(%arg0: i32) -> (i32, i32) {
    %c0_i32 = arith.constant 0 : i32
    %c0_i32_0 = arith.constant 0 : i32
    %c0_i32_1 = arith.constant 0 : i32
    return %c0_i32, %c0_i32_0 : i32, i32
  }
  func.func @transform_7(%arg0: i32) -> (i32, i32) {
    %c0_i32 = arith.constant 0 : i32
    %c0_i32_0 = arith.constant 0 : i32
    return %arg0, %c0_i32 : i32, i32
  }
}

</mosaic_0001>

<bundles_post_ra>
// kernel: tpu_custom_call.1
= control target key start
LH: loop header
LB: loop body
LE: loop exit
PB: predicated region body
PF: predicated region fallthrough
CT: control target
= control target key end

     0   :  { %12 = vsyncpa [#allocation3], 0  ;;  %s825_s0 = inlined_call_operand.hbm [shape: f32[8,128], index: 0, kind: input, shape index: {}]   ;;  %s826_s1 = inlined_call_operand.hbm [shape: bf16[128,128], index: 1, kind: input, shape index: {}]   ;;  %s827_s2 = inlined_call_operand.vmem [shape: f32[1,128], index: 2, kind: input, shape index: {}]   ;;  %s828_s3 = inlined_call_operand.hbm [shape: bf16[128,128], index: 3, kind: input, shape index: {}]   ;;  %s829_s4 = inlined_call_operand.vmem [shape: f32[1,128], index: 4, kind: input, shape index: {}]   ;;  %s830_s5 = inlined_call_operand.hbm [shape: bf16[128,128], index: 5, kind: input, shape index: {}]   ;;  %s831_s6 = inlined_call_operand.vmem [shape: f32[1,128], index: 6, kind: input, shape index: {}]   ;;  %s832_s7 = inlined_call_operand.hbm [shape: f32[8,128], index: 7, kind: output, shape index: {}]  }
   0x1   :  { %13 = vsyncpa [#allocation6], 0 }
   0x2   :  { %14 = vsyncpa [#allocation9], 0 }
   0x3   :  { %15 = vsyncpa [#allocation4], 0  ;;  %s713_s24 = smov [#allocation5]  }
   0x4   :  { %s31_s25 = sshll.u32 %s713_s24, 4  ;;  %s32_s25 = int_to_ptr.vmem [resolvable:$true] %s31_s25 }
   0x5   :  { %s613_s26 = scalar_lea.vmem %s32_s25, 1024  ;;  %p618_p1 = scmp.lt.s32.totalorder %s32_s25, %s32_s25 }
   0x6   :  { %p614_p0 = scmp.ne.s32.totalorder %s32_s25, %s613_s26  ;;  %p619_p2 = scmp.lt.s32.totalorder %s613_s26, %s613_s26 }
   0x8   :  { %p620_p3 = por %p619_p2, %p618_p1 }
   0xa   :  { %p621_p4 = pnand %p620_p3, %p614_p0 }
   0xc   :  { %624 = shalt.err (!%p621_p4)
}
   0xd   :  { %s714_s27 = smov 64   ;;  %s715_s28 = smov 4  }
   0xe   :  { %37 = dma.hbm_to_vmem [thread:$0]  %s826_s1, 1024, %s32_s25, [#allocation6], %s714_s27, %s714_s27, %s715_s28  }
   0xf   :  { %s716_s8 = smov [#allocation2]   ;;  %s717_s10 = smov [#allocation7]  }
  0x10   :  { %s22_s9 = sshll.u32 %s716_s8, 4  ;;  %s45_s11 = sshll.u32 %s717_s10, 4  ;;  %s23_s9 = int_to_ptr.vmem [resolvable:$true] %s22_s9  ;;  %s46_s11 = int_to_ptr.vmem [resolvable:$true] %s45_s11 }
  0x11   :  { %s633_s12 = scalar_lea.vmem %s23_s9, 128  ;;  %p638_p6 = scmp.lt.s32.totalorder %s23_s9, %s23_s9 }
  0x12   :  { %p634_p5 = scmp.ne.s32.totalorder %s23_s9, %s633_s12  ;;  %p639_p7 = scmp.lt.s32.totalorder %s633_s12, %s633_s12 }
  0x14   :  { %p640_p8 = por %p639_p7, %p638_p6 }
  0x16   :  { %p641_p9 = pnand %p640_p8, %p634_p5 }
  0x18   :  { %644 = shalt.err (!%p641_p9)
}
  0x19   :  { %25 = dma.hbm_to_vmem [thread:$0]  %s825_s0, 128, %s23_s9, [#allocation3]  }
  0x1a   :  { %s653_s15 = scalar_lea.vmem %s46_s11, 1024  ;;  %p658_p11 = scmp.lt.s32.totalorder %s46_s11, %s46_s11 }
  0x1b   :  { %p654_p10 = scmp.ne.s32.totalorder %s46_s11, %s653_s15  ;;  %p659_p12 = scmp.lt.s32.totalorder %s653_s15, %s653_s15 }
  0x1d   :  { %p660_p13 = por %p659_p12, %p658_p11 }
  0x1f   :  { %p661_p0 = pnand %p660_p13, %p654_p10 }
  0x21   :  { %664 = shalt.err (!%p661_p0)
}
  0x22   :  { %51 = dma.hbm_to_vmem [thread:$0]  %s828_s3, 1024, %s46_s11, [#allocation6], %s714_s27, %s714_s27, %s715_s28  }
  0x23   :  { %s718_s17 = smov [#allocation8]  }
  0x24   :  { %s59_s18 = sshll.u32 %s718_s17, 4  ;;  %s60_s18 = int_to_ptr.vmem [resolvable:$true] %s59_s18 }
  0x25   :  { %s673_s19 = scalar_lea.vmem %s60_s18, 1024  ;;  %p678_p2 = scmp.lt.s32.totalorder %s60_s18, %s60_s18 }
  0x26   :  { %p674_p1 = scmp.ne.s32.totalorder %s60_s18, %s673_s19  ;;  %p679_p3 = scmp.lt.s32.totalorder %s673_s19, %s673_s19 }
  0x28   :  { %p680_p4 = por %p679_p3, %p678_p2 }
  0x2a   :  { %p681_p5 = pnand %p680_p4, %p674_p1 }
  0x2c   :  { %684 = shalt.err (!%p681_p5)
}
  0x2d   :  { %65 = dma.hbm_to_vmem [thread:$0]  %s830_s5, 1024, %s60_s18, [#allocation9], %s714_s27, %s714_s27, %s715_s28  }
  0x2e   :  { %705 = dma.done.wait [#allocation3], 128  }
  0x2f   :  { %706 = vsyncadd [#allocation3], 4294967168 }
  0x30   :  { %707 = dma.done.wait [#allocation6], 2048  }
  0x31   :  { %708 = vsyncadd [#allocation6], 4294965248 }
  0x32   :  { %709 = dma.done.wait [#allocation9], 1024  }
  0x33   :  { %710 = vsyncadd [#allocation9], 4294966272  ;;  %v719_v0 = vmov 0.0   ;;  %vm720_vm0 = vmmov 0   ;;  %v573_v1 = vld [vmem:[#allocation5 + $0x38] sm:$0xff]   ;;  %v574_v2 = vld [vmem:[#allocation5 + $0x30] sm:$0xff]  }
  0x34   :  { %504 = vmatprep.subr.bf16.mxu0 %v719_v0  ;;  %520 = vmatprep.mubr.msk.bf16.mxu0 %vm720_vm0, %v719_v0  ;;  %v575_v3 = vld [vmem:[#allocation5 + $0x28] sm:$0xff]   ;;  %v576_v4 = vld [vmem:[#allocation5 + $0x20] sm:$0xff]   ;;  %v577_v5 = vld [vmem:[#allocation5 + $0x18] sm:$0xff]   ;;  %s721_s24 = smov [#allocation10]  }
  0x35   :  { %524 = vmatprep.subr.bf16.mxu1 %v719_v0  ;;  %540 = vmatprep.mubr.msk.bf16.mxu1 %vm720_vm0, %v719_v0  ;;  %v578_v6 = vld [vmem:[#allocation5 + $0x10] sm:$0xff]   ;;  %v579_v7 = vld [vmem:[#allocation5 + $0x8] sm:$0xff]   ;;  %v580_v8 = vld [vmem:[#allocation5] sm:$0xff]   ;;  %s437_s25 = sshll.u32 %s721_s24, 4  ;;  %s438_s25 = int_to_ptr.vmem [resolvable:$true] %s437_s25 }
  0x36   :  { %505 = vmatpush3.bf16.msra.mxu0 %v573_v1  ;;  %v81_v9 = vld [vmem:[#allocation2] sm:$0xff]  ;;  %v582_v12 = vld [vmem:[#allocation7 + $0x30] sm:$0xff]   ;;  %v583_v13 = vld [vmem:[#allocation7 + $0x28] sm:$0xff]   ;;  %p690_p7 = scmp.lt.s32.totalorder %s438_s25, %s438_s25 }
  0x37   :  { %506 = vmatprep.subr.bf16.mxu0 %v719_v0  ;;  %v99_v10 = vpack.c.bf16 %v81_v9, %v81_v9  ;;  %v581_v11 = vld [vmem:[#allocation7 + $0x38] sm:$0xff]   ;;  %v584_v14 = vld [vmem:[#allocation7 + $0x20] sm:$0xff]   ;;  %v586_v16 = vld [vmem:[#allocation7 + $0x10] sm:$0xff]  }
  0x38   :  { %525 = vmatpush3.bf16.msra.mxu1 %v581_v11  ;;  %v585_v15 = vld [vmem:[#allocation7 + $0x18] sm:$0xff]   ;;  %v587_v17 = vld [vmem:[#allocation7 + $0x8] sm:$0xff]   ;;  %v588_v18 = vld [vmem:[#allocation7] sm:$0xff]  }
  0x39   :  { %526 = vmatprep.subr.bf16.mxu1 %v719_v0  ;;  %v448_v19 = vld [vmem:[%s827_s2] ss:$0 sm:$0xff]  ;;  %v590_v31 = vld [vmem:[#allocation8 + $0x30] sm:$0xff]   ;;  %v591_v32 = vld [vmem:[#allocation8 + $0x28] sm:$0xff]  }
  0x3a   :  { %507 = vmatpush3.bf16.msra.mxu0 %v574_v2  ;;  %v589_v30 = vld [vmem:[#allocation8 + $0x38] sm:$0xff]   ;;  %v592_v33 = vld [vmem:[#allocation8 + $0x20] sm:$0xff]   ;;  %v594_v35 = vld [vmem:[#allocation8 + $0x10] sm:$0xff]  }
  0x3b   :  { %508 = vmatprep.subr.bf16.mxu0 %v719_v0  ;;  %v593_v34 = vld [vmem:[#allocation8 + $0x18] sm:$0xff]   ;;  %v595_v36 = vld [vmem:[#allocation8 + $0x8] sm:$0xff]   ;;  %v596_v37 = vld [vmem:[#allocation8] sm:$0xff]  }
  0x3c   :  { %527 = vmatpush3.bf16.msra.mxu1 %v582_v12  ;;  %v458_v38 = vld [vmem:[%s829_s4] ss:$0 sm:$0xff]  ;;  %s685_s4 = scalar_lea.vmem %s438_s25, 128 }
  0x3d   :  { %528 = vmatprep.subr.bf16.mxu1 %v719_v0  ;;  %v468_v49 = vld [vmem:[%s831_s6] ss:$0 sm:$0xff]  ;;  %p686_p6 = scmp.ne.s32.totalorder %s438_s25, %s685_s4  ;;  %p691_p8 = scmp.lt.s32.totalorder %s685_s4, %s685_s4 }
  0x3e   :  { %509 = vmatpush3.bf16.msra.mxu0 %v575_v3 }
  0x3f   :  { %510 = vmatprep.subr.bf16.mxu0 %v719_v0  ;;  %p692_p9 = por %p691_p8, %p690_p7 }
  0x40   :  { %529 = vmatpush3.bf16.msra.mxu1 %v583_v13 }
  0x41   :  { %530 = vmatprep.subr.bf16.mxu1 %v719_v0  ;;  %p693_p10 = pnand %p692_p9, %p686_p6 }
  0x42   :  { %511 = vmatpush3.bf16.msra.mxu0 %v576_v4 }
  0x43   :  { %512 = vmatprep.subr.bf16.mxu0 %v719_v0 }
  0x44   :  { %531 = vmatpush3.bf16.msra.mxu1 %v584_v14 }
  0x45   :  { %532 = vmatprep.subr.bf16.mxu1 %v719_v0 }
  0x46   :  { %513 = vmatpush3.bf16.msra.mxu0 %v577_v5 }
  0x47   :  { %514 = vmatprep.subr.bf16.mxu0 %v719_v0 }
  0x48   :  { %533 = vmatpush3.bf16.msra.mxu1 %v585_v15 }
  0x49   :  { %534 = vmatprep.subr.bf16.mxu1 %v719_v0 }
  0x4a   :  { %515 = vmatpush3.bf16.msra.mxu0 %v578_v6 }
  0x4b   :  { %516 = vmatprep.subr.bf16.mxu0 %v719_v0 }
  0x4c   :  { %535 = vmatpush3.bf16.msra.mxu1 %v586_v16 }
  0x4d   :  { %536 = vmatprep.subr.bf16.mxu1 %v719_v0 }
  0x4e   :  { %517 = vmatpush3.bf16.msra.mxu0 %v579_v7 }
  0x4f   :  { %518 = vmatprep.subr.bf16.mxu0 %v719_v0 }
  0x50   :  { %537 = vmatpush3.bf16.msra.mxu1 %v587_v17 }
  0x51   :  { %538 = vmatprep.subr.bf16.mxu1 %v719_v0 }
  0x52   :  { %519 = vmatpush3.bf16.msra.mxu0 %v580_v8 }
  0x53   :  { %544 = vmatprep.subr.bf16.mxu0 %v719_v0 }
  0x54   :  { %539 = vmatpush3.bf16.msra.mxu1 %v588_v18 }
  0x55   :  { %521 = vmatmul.mubr.bf16.vlgmr.msra.gmra.mxu0 %v99_v10 }
  0x56   :  { %560 = vmatprep.mubr.msk.bf16.mxu0 %vm720_vm0, %v719_v0  ;;  %545 = vmatpush3.bf16.msra.mxu0 %v589_v30 }
  0x57   :  { %546 = vmatprep.subr.bf16.mxu0 %v719_v0 }
  0x5a   :  { %547 = vmatpush3.bf16.msra.mxu0 %v590_v31 }
  0x5b   :  { %548 = vmatprep.subr.bf16.mxu0 %v719_v0 }
  0x5e   :  { %549 = vmatpush3.bf16.msra.mxu0 %v591_v32 }
  0x5f   :  { %550 = vmatprep.subr.bf16.mxu0 %v719_v0 }
  0x62   :  { %551 = vmatpush3.bf16.msra.mxu0 %v592_v33 }
  0x63   :  { %552 = vmatprep.subr.bf16.mxu0 %v719_v0 }
  0x66   :  { %553 = vmatpush3.bf16.msra.mxu0 %v593_v34 }
  0x67   :  { %554 = vmatprep.subr.bf16.mxu0 %v719_v0 }
  0x6a   :  { %555 = vmatpush3.bf16.msra.mxu0 %v594_v35 }
  0x6b   :  { %556 = vmatprep.subr.bf16.mxu0 %v719_v0 }
  0x6e   :  { %557 = vmatpush3.bf16.msra.mxu0 %v595_v36 }
  0x6f   :  { %558 = vmatprep.subr.bf16.mxu0 %v719_v0 }
  0x72   :  { %559 = vmatpush3.bf16.msra.mxu0 %v596_v37 }
 0x115   :  { %v188_v20 = vpop.f32.mrf.mxu0 }
 0x116   :  { %v189_v21 = vadd.f32 %v448_v19, %v188_v20 }
 0x117   :  { %v522_v22 = vpop.f32.mrf.mxu0 }
 0x118   :  { %v457_v23 = vmul.f32 -1.442695, %v189_v21 }
 0x119   :  { %v191_v24 = vpop.f32.mrf.mxu0 }
 0x11a   :  { %597 = vpow2.f32 %v457_v23 }
 0x11b   :  { %v523_v25 = vpop.f32.mrf.mxu0 }
 0x127   :  { %v598_v26 = vpop.eup %597 }
 0x128   :  { %v197_v27 = vadd.f32 1.0, %v598_v26 }
 0x12a   :  { %599 = vrcp.f32 %v197_v27 }
 0x137   :  { %v600_v28 = vpop.eup %599 }
 0x138   :  { %v217_v29 = vpack.c.bf16 %v600_v28, %v600_v28 }
 0x13a   :  { %541 = vmatmul.mubr.bf16.vlgmr.msra.gmra.mxu1 %v217_v29 }
 0x1fa   :  { %v306_v39 = vpop.f32.mrf.mxu1 }
 0x1fb   :  { %v307_v40 = vadd.f32 %v458_v38, %v306_v39 }
 0x1fc   :  { %v542_v41 = vpop.f32.mrf.mxu1 }
 0x1fd   :  { %v467_v42 = vmul.f32 -1.442695, %v307_v40 }
 0x1fe   :  { %v309_v43 = vpop.f32.mrf.mxu1 }
 0x1ff   :  { %601 = vpow2.f32 %v467_v42 }
 0x200   :  { %v543_v44 = vpop.f32.mrf.mxu1 }
 0x20c   :  { %v602_v45 = vpop.eup %601 }
 0x20d   :  { %v315_v46 = vadd.f32 1.0, %v602_v45 }
 0x20f   :  { %603 = vrcp.f32 %v315_v46 }
 0x21c   :  { %v604_v47 = vpop.eup %603 }
 0x21d   :  { %v335_v48 = vpack.c.bf16 %v604_v47, %v604_v47 }
 0x21f   :  { %561 = vmatmul.mubr.bf16.vlgmr.msra.gmra.mxu0 %v335_v48 }
 0x2df   :  { %v424_v50 = vpop.f32.mrf.mxu0 }
 0x2e0   :  { %v425_v51 = vadd.f32 %v468_v49, %v424_v50 }
 0x2e1   :  { %v562_v52 = vpop.f32.mrf.mxu0 }
 0x2e2   :  { %430 = vst [vmem:[#allocation10] sm:$0xff] %v425_v51 }
 0x2e3   :  { %v427_v53 = vpop.f32.mrf.mxu0 }
 0x2e4   :  { %696 = shalt.err (!%p693_p10)
}
 0x2e5   :  { %440 = dma.vmem_to_hbm [thread:$0]  %s438_s25, 128, %s832_s7, [#allocation4]   ;;  %v563_v54 = vpop.f32.mrf.mxu0 }
 0x2e6   :  { %711 = dma.done.wait [#allocation4], 128  }
 0x2e7   :  { %712 = vsyncadd [#allocation4], 4294967168 }
 0x2e8   :  { %444 = vsyncpa [#allocation3], 1 }
 0x2e9   :  { %445 = vsyncpa [#allocation6], 1 }
 0x2ea   :  { %446 = vsyncpa [#allocation9], 1 }
 0x2eb   :  { %447 = vsyncpa [#allocation4], 1 }

</bundles_post_ra>
